<compile_context>
chip_gen: v6e
topology: v6e:2x2x1
jax: 0.10.0
libtpu: 0.0.40
codegen_flags: <defaults>
</compile_context>

<pallas_src>
import functools

import jax
import jax.numpy as jnp
from jax.experimental import pallas as pl
from jax.experimental.pallas import tpu as pltpu

LATENT_DIM = 3
NUM_CLASSES = 10
EMB_DIM = 16
HIDDEN = 128
IMG_FLAT = 28 * 28
EMB_AUG = EMB_DIM + 1            # embedding + ones column (bias folded into weight)
AUX_COLS = 2 * EMB_AUG + LATENT_DIM   # [enc_emb|1 | dec_emb|1 | eps] = 37
MULV_OUT = 8                     # mu(3) + logvar(3) padded to 8 columns
MAX_BATCH_TILE = 1024            # rows per grid step (VMEM-safe on v5e/v6e/v7x)
VMEM_LIMIT_BYTES = 48 * 1024 * 1024


def _cvae_kernel(
    # data inputs (batch-tiled)
    x_ref,          # (TB, 784)  f32    flattened image (cast to bf16 in-kernel)
    aux_ref,        # (TB, 37)   f32    [relu(enc emb),1 | relu(dec emb),1 | eps]
    # parameters (VMEM-resident across batch tiles)
    e_fc_wx_ref,    # (784, 128) bf16   encoder fc_hidden, image part
    e_fc_wlb_ref,   # (17, 128)  f32    encoder fc_hidden, [emb part ; bias row]
    mulv_w_ref,     # (128, 8)   f32    fused [mu | logvar | 0-pad] head weight
    mulv_b_ref,     # (1, 8)     f32    fused [mu | logvar | 0-pad] head bias
    d_fc_wz_ref,    # (3, 128)   f32    decoder fc_hidden, latent part
    d_fc_wlb_ref,   # (17, 128)  f32    decoder fc_hidden, [emb part ; bias row]
    d_out_w_ref,    # (128, 784) bf16
    d_out_b_ref,    # (1, 784)   f32
    # outputs
    recon_ref,      # (TB, 784)  bf16
    mulv_ref,       # (TB, 8)    f32    [mu | logvar | pad]
):
    f32 = jnp.float32

    aux = aux_ref[...]
    e_emb = aux[:, :EMB_AUG]                          # (TB, 17)
    d_emb = aux[:, EMB_AUG:2 * EMB_AUG]               # (TB, 17)
    eps = aux[:, 2 * EMB_AUG:2 * EMB_AUG + LATENT_DIM]  # (TB, 3)

    # ---- Encoder ----
    # cat([x, emb, 1]) @ W  ==  x @ Wx + [emb,1] @ [Wl ; b]
    x_bf = x_ref[...].astype(jnp.bfloat16)            # VPU cast; free in a mem-bound kernel
    e_h = jnp.maximum(
        jnp.dot(x_bf, e_fc_wx_ref[...], preferred_element_type=f32)
        + jnp.dot(e_emb, e_fc_wlb_ref[...], preferred_element_type=f32),
        0.0,
    )
    # Fused mu|logvar head (f32 end-to-end), padded to 8 output columns.
    mulv = jnp.dot(e_h, mulv_w_ref[...], preferred_element_type=f32) + mulv_b_ref[...]
    mulv_ref[...] = mulv

    # ---- Reparameterize ----
    mu = mulv[:, :LATENT_DIM]
    logvar = mulv[:, LATENT_DIM:2 * LATENT_DIM]
    z = mu + eps * jnp.exp(0.5 * logvar)

    # ---- Decoder ----
    d_h = jnp.maximum(
        jnp.dot(z, d_fc_wz_ref[...], preferred_element_type=f32)
        + jnp.dot(d_emb, d_fc_wlb_ref[...], preferred_element_type=f32),
        0.0,
    )
    logits = (
        jnp.dot(d_h.astype(jnp.bfloat16), d_out_w_ref[...], preferred_element_type=f32)
        + d_out_b_ref[...]
    )
    # bf16 store: halves the dominant HBM write. sigmoid in [0,1] -> <0.5% error.
    recon_ref[...] = jax.nn.sigmoid(logits).astype(jnp.bfloat16)


def init_params(key):
    """nn.Linear-style init (uniform +-1/sqrt(fan_in)); weights stored (in, out)."""
    def linear(k, fan_in, fan_out):
        kw, kb = jax.random.split(k)
        bound = 1.0 / jnp.sqrt(fan_in)
        w = jax.random.uniform(kw, (fan_in, fan_out), jnp.float32, -bound, bound)
        b = jax.random.uniform(kb, (1, fan_out), jnp.float32, -bound, bound)
        return w, b

    keys = jax.random.split(key, 8)
    e_emb_w, e_emb_b = linear(keys[0], NUM_CLASSES, EMB_DIM)
    e_fc_w, e_fc_b = linear(keys[1], IMG_FLAT + EMB_DIM, HIDDEN)
    mu_w, mu_b = linear(keys[2], HIDDEN, LATENT_DIM)
    lv_w, lv_b = linear(keys[3], HIDDEN, LATENT_DIM)
    d_emb_w, d_emb_b = linear(keys[4], NUM_CLASSES, EMB_DIM)
    d_fc_w, d_fc_b = linear(keys[5], LATENT_DIM + EMB_DIM, HIDDEN)
    d_out_w, d_out_b = linear(keys[6], HIDDEN, IMG_FLAT)
    return (e_emb_w, e_emb_b, e_fc_w, e_fc_b, mu_w, mu_b, lv_w, lv_b,
            d_emb_w, d_emb_b, d_fc_w, d_fc_b, d_out_w, d_out_b)


def pack_params(raw):
    """One-time transformation of raw (PyTorch-layout) params into kernel operands."""
    (e_emb_w, e_emb_b, e_fc_w, e_fc_b, mu_w, mu_b, lv_w, lv_b,
     d_emb_w, d_emb_b, d_fc_w, d_fc_b, d_out_w, d_out_b) = raw
    mulv_w = jnp.concatenate([mu_w, lv_w], axis=1)                         # (128, 6)
    mulv_b = jnp.concatenate([mu_b, lv_b], axis=1)                         # (1, 6)
    pad = MULV_OUT - 2 * LATENT_DIM
    return dict(
        # embedding tables stay f32 in HBM; gathered in the wrapper (one_hot @ W == W[label])
        e_emb_w=e_emb_w, e_emb_b=e_emb_b, d_emb_w=d_emb_w, d_emb_b=d_emb_b,
        # big matmul weights -> bf16 (MXU native), f32 accumulation in-kernel
        e_fc_wx=e_fc_w[:IMG_FLAT].astype(jnp.bfloat16),                    # (784, 128)
        d_out_w=d_out_w.astype(jnp.bfloat16),                              # (128, 784)
        # bias folded in as an extra weight row (ones column on the input side)
        e_fc_wlb=jnp.concatenate([e_fc_w[IMG_FLAT:], e_fc_b], axis=0),     # (17, 128)
        d_fc_wlb=jnp.concatenate([d_fc_w[LATENT_DIM:], d_fc_b], axis=0),   # (17, 128)
        d_fc_wz=d_fc_w[:LATENT_DIM],                                       # (3, 128)
        # fused mu|logvar head, zero-padded to 8 columns (f32: precision matters for KL)
        mulv_w=jnp.pad(mulv_w, ((0, 0), (0, pad))),                        # (128, 8)
        mulv_b=jnp.pad(mulv_b, ((0, 0), (0, pad))),                        # (1, 8)
        d_out_b=d_out_b,                                                   # (1, 784)
    )


def _round_up(x, m):
    return (x + m - 1) // m * m


def _batch_tiling(b):
    """Pick (batch tile, padded batch).

    * tiny batches (< 64): one tile, padded to a multiple of 8 (block == full array).
    * otherwise: >= 2 tiles (v7x megacore split + DMA/compute pipelining), up to 8 tiles
      for big batches, tile rows a multiple of 16 (bf16 sublane packing), capped at
      MAX_BATCH_TILE so per-tile VMEM stays bounded (safe under v7x's 64 MiB / TC).
    """
    if b < 64:
        bp = _round_up(b, 8)
        return bp, bp
    bp = _round_up(b, 16)
    n_tiles = max(2, min(8, bp // 128), -(-bp // MAX_BATCH_TILE))
    tb = min(_round_up(-(-bp // n_tiles), 16), MAX_BATCH_TILE)
    n_tiles = -(-bp // tb)
    return tb, tb * n_tiles


@functools.partial(jax.jit, static_argnames=())
def cvae_forward(image, label, eps, packed):
    """image: (B,1,28,28) f32, label: (B,) int32, eps: (B,3) f32 noise."""
    B = image.shape[0]
    TB, Bp = _batch_tiling(B)
    pad = Bp - B
    f32 = jnp.float32

    # --- glue (wrapper-side, pure XLA; no dtype round trips through HBM) ---
    x = image.reshape(B, IMG_FLAT).astype(f32)                      # view(B, -1), stays f32
    ones = jnp.ones((B, 1), f32)
    # one_hot(label) @ W + b  ==  W[label] + b  (exact)
    e_emb = jax.nn.relu(jnp.take(packed["e_emb_w"], label, axis=0) + packed["e_emb_b"])
    d_emb = jax.nn.relu(jnp.take(packed["d_emb_w"], label, axis=0) + packed["d_emb_b"])
    # single (B, 37) side-input: [enc_emb | 1 | dec_emb | 1 | eps]
    aux = jnp.concatenate([e_emb, ones, d_emb, ones, eps.astype(f32)], axis=1)
    if pad:
        x = jnp.pad(x, ((0, pad), (0, 0)))
        aux = jnp.pad(aux, ((0, pad), (0, 0)))

    grid = (Bp // TB,)
    row = lambda i: (i, 0)     # batch-tiled operands
    keep = lambda i: (0, 0)    # VMEM-resident weights (block index never changes)

    in_specs = [
        pl.BlockSpec((TB, IMG_FLAT), row),             # x (f32)
        pl.BlockSpec((TB, AUX_COLS), row),             # aux (f32)
        pl.BlockSpec((IMG_FLAT, HIDDEN), keep),        # e_fc_wx (bf16)
        pl.BlockSpec((EMB_AUG, HIDDEN), keep),         # e_fc_wlb
        pl.BlockSpec((HIDDEN, MULV_OUT), keep),        # mulv_w
        pl.BlockSpec((1, MULV_OUT), keep),             # mulv_b
        pl.BlockSpec((LATENT_DIM, HIDDEN), keep),      # d_fc_wz
        pl.BlockSpec((EMB_AUG, HIDDEN), keep),         # d_fc_wlb
        pl.BlockSpec((HIDDEN, IMG_FLAT), keep),        # d_out_w (bf16)
        pl.BlockSpec((1, IMG_FLAT), keep),             # d_out_b
    ]
    out_specs = (
        pl.BlockSpec((TB, IMG_FLAT), row),             # recon (bf16)
        pl.BlockSpec((TB, MULV_OUT), row),             # [mu | logvar | pad] (f32)
    )

    flops = 2 * Bp * (IMG_FLAT * HIDDEN + EMB_AUG * HIDDEN + HIDDEN * MULV_OUT
                      + LATENT_DIM * HIDDEN + EMB_AUG * HIDDEN + HIDDEN * IMG_FLAT)
    transcendentals = Bp * (IMG_FLAT + LATENT_DIM)     # sigmoid + exp
    bytes_accessed = (
        Bp * IMG_FLAT * 4 + Bp * AUX_COLS * 4                                  # inputs
        + (IMG_FLAT * HIDDEN + HIDDEN * IMG_FLAT) * 2                          # bf16 W
        + (2 * EMB_AUG * HIDDEN + HIDDEN * MULV_OUT + MULV_OUT
           + LATENT_DIM * HIDDEN + IMG_FLAT) * 4                               # f32 params
        + Bp * IMG_FLAT * 2 + Bp * MULV_OUT * 4                                # outputs
    )

    recon_flat, mulv = pl.pallas_call(
        _cvae_kernel,
        out_shape=(
            jax.ShapeDtypeStruct((Bp, IMG_FLAT), jnp.bfloat16),
            jax.ShapeDtypeStruct((Bp, MULV_OUT), f32),
        ),
        grid=grid,
        in_specs=in_specs,
        out_specs=out_specs,
        compiler_params=pltpu.CompilerParams(
            dimension_semantics=("parallel",),         # megacore split on v7x
            vmem_limit_bytes=VMEM_LIMIT_BYTES,         # bounded; TB<=1024 uses ~20 MiB live
        ),
        cost_estimate=pl.CostEstimate(
            flops=flops, transcendentals=transcendentals, bytes_accessed=bytes_accessed
        ),
    )(
        x, aux,
        packed["e_fc_wx"], packed["e_fc_wlb"], packed["mulv_w"], packed["mulv_b"],
        packed["d_fc_wz"], packed["d_fc_wlb"], packed["d_out_w"], packed["d_out_b"],
    )

    # Cast back to f32 only at the user-facing boundary (kernel HBM write stays bf16).
    reconstructed_image = recon_flat[:B].astype(f32).reshape(B, 1, 28, 28)
    mu = mulv[:B, :LATENT_DIM]
    logvar = mulv[:B, LATENT_DIM:2 * LATENT_DIM]
    return reconstructed_image, mu, logvar


def _reference(image, label, eps, raw):
    """Pure-JAX f32 reference (matches the PyTorch module)."""
    (e_emb_w, e_emb_b, e_fc_w, e_fc_b, mu_w, mu_b, lv_w, lv_b,
     d_emb_w, d_emb_b, d_fc_w, d_fc_b, d_out_w, d_out_b) = raw
    B = image.shape[0]
    x = image.reshape(B, IMG_FLAT)
    oh = jax.nn.one_hot(label, NUM_CLASSES, dtype=jnp.float32)
    e_emb = jax.nn.relu(oh @ e_emb_w + e_emb_b)
    e_h = jax.nn.relu(jnp.concatenate([x, e_emb], axis=1) @ e_fc_w + e_fc_b)
    mu = e_h @ mu_w + mu_b
    logvar = e_h @ lv_w + lv_b
    z = mu + eps * jnp.exp(0.5 * logvar)
    d_emb = jax.nn.relu(oh @ d_emb_w + d_emb_b)
    d_h = jax.nn.relu(jnp.concatenate([z, d_emb], axis=1) @ d_fc_w + d_fc_b)
    recon = jax.nn.sigmoid(d_h @ d_out_w + d_out_b).reshape(B, 1, 28, 28)
    return recon, mu, logvar


if __name__ == "__main__":
    key = jax.random.PRNGKey(0)
    k_params, k_img, k_lbl, k_eps = jax.random.split(key, 4)

    B = 2
    raw_params = init_params(k_params)
    packed = pack_params(raw_params)
    image = jax.random.uniform(k_img, (B, 1, 28, 28), jnp.float32)
    label = jax.random.randint(k_lbl, (B,), 0, NUM_CLASSES, dtype=jnp.int32)
    eps = jax.random.normal(k_eps, (B, LATENT_DIM), jnp.float32)  # randn_like noise

    recon, mu, logvar = cvae_forward(image, label, eps, packed)
    jax.block_until_ready((recon, mu, logvar))

    # sanity check vs. f32 reference (loose tolerance: big matmuls + recon store in bf16)
    r_ref, mu_ref, lv_ref = _reference(image, label, eps, raw_params)
    assert recon.shape == (B, 1, 28, 28) and mu.shape == (B, LATENT_DIM)
    assert logvar.shape == (B, LATENT_DIM)
    assert jnp.allclose(recon, r_ref, atol=2e-2, rtol=2e-2)
    assert jnp.allclose(mu, mu_ref, atol=1e-2, rtol=1e-2)
    assert jnp.allclose(logvar, lv_ref, atol=1e-2, rtol=1e-2)

    print("KERNEL_OK")
</pallas_src>

<mosaic_0001>
module attributes {stable_mosaic.version = 11 : i64} {
  func.func @_cvae_kernel(%arg0: i32, %arg1: memref<8x784xf32, #tpu.memory_space<vmem>>, %arg2: memref<8x37xf32, #tpu.memory_space<vmem>>, %arg3: memref<784x128xbf16, #tpu.memory_space<vmem>>, %arg4: memref<17x128xf32, #tpu.memory_space<vmem>>, %arg5: memref<128x8xf32, #tpu.memory_space<vmem>>, %arg6: memref<1x8xf32, #tpu.memory_space<vmem>>, %arg7: memref<3x128xf32, #tpu.memory_space<vmem>>, %arg8: memref<17x128xf32, #tpu.memory_space<vmem>>, %arg9: memref<128x784xbf16, #tpu.memory_space<vmem>>, %arg10: memref<1x784xf32, #tpu.memory_space<vmem>>, %arg11: memref<8x784xbf16, #tpu.memory_space<vmem>>, %arg12: memref<8x8xf32, #tpu.memory_space<vmem>>) attributes {dimension_semantics = [#tpu.dimension_semantics<parallel>], iteration_bounds = array<i64: 1>, scalar_prefetch = 0 : i64, scratch_operands = 0 : i64, tpu.core_type = #tpu.core_type<tc>, window_params = [{transform_indices = @transform_0, window_bounds = array<i64: 8, 784>}, {transform_indices = @transform_1, window_bounds = array<i64: 8, 37>}, {pipeline_mode = #tpu.pipeline_mode<synchronous>, transform_indices = @transform_2, window_bounds = array<i64: 784, 128>}, {pipeline_mode = #tpu.pipeline_mode<synchronous>, transform_indices = @transform_3, window_bounds = array<i64: 17, 128>}, {pipeline_mode = #tpu.pipeline_mode<synchronous>, transform_indices = @transform_4, window_bounds = array<i64: 128, 8>}, {pipeline_mode = #tpu.pipeline_mode<synchronous>, transform_indices = @transform_5, window_bounds = array<i64: 1, 8>}, {pipeline_mode = #tpu.pipeline_mode<synchronous>, transform_indices = @transform_6, window_bounds = array<i64: 3, 128>}, {pipeline_mode = #tpu.pipeline_mode<synchronous>, transform_indices = @transform_7, window_bounds = array<i64: 17, 128>}, {pipeline_mode = #tpu.pipeline_mode<synchronous>, transform_indices = @transform_8, window_bounds = array<i64: 128, 784>}, {pipeline_mode = #tpu.pipeline_mode<synchronous>, transform_indices = @transform_9, window_bounds = array<i64: 1, 784>}, {transform_indices = @transform_10, window_bounds = array<i64: 8, 784>}, {transform_indices = @transform_11, window_bounds = array<i64: 8, 8>}]} {
    %c0 = arith.constant 0 : index
    %c0_0 = arith.constant 0 : index
    %0 = vector.load %arg2[%c0, %c0_0] : memref<8x37xf32, #tpu.memory_space<vmem>>, vector<8x37xf32>
    %1 = vector.extract_strided_slice %0 {offsets = [0, 0], sizes = [8, 17], strides = [1, 1]} : vector<8x37xf32> to vector<8x17xf32>
    %2 = vector.extract_strided_slice %0 {offsets = [0, 17], sizes = [8, 17], strides = [1, 1]} : vector<8x37xf32> to vector<8x17xf32>
    %3 = vector.extract_strided_slice %0 {offsets = [0, 34], sizes = [8, 3], strides = [1, 1]} : vector<8x37xf32> to vector<8x3xf32>
    %c0_1 = arith.constant 0 : index
    %c0_2 = arith.constant 0 : index
    %4 = vector.load %arg1[%c0_1, %c0_2] : memref<8x784xf32, #tpu.memory_space<vmem>>, vector<8x784xf32>
    %5 = arith.truncf %4 : vector<8x784xf32> to vector<8x784xbf16>
    %c0_3 = arith.constant 0 : index
    %c0_4 = arith.constant 0 : index
    %6 = vector.load %arg3[%c0_3, %c0_4] : memref<784x128xbf16, #tpu.memory_space<vmem>>, vector<784x128xbf16>
    %cst = arith.constant dense<0.000000e+00> : vector<8x128xf32>
    %7 = tpu.matmul %5, %6, %cst {dimension_numbers = #tpu.dot_dimension_numbers<[1], [0], [0], [1], [0, 0, 1, 1], [], []>} : vector<8x784xbf16>, vector<784x128xbf16>, vector<8x128xf32> -> vector<8x128xf32>
    %c0_5 = arith.constant 0 : index
    %c0_6 = arith.constant 0 : index
    %8 = vector.load %arg4[%c0_5, %c0_6] : memref<17x128xf32, #tpu.memory_space<vmem>>, vector<17x128xf32>
    %cst_7 = arith.constant dense<0.000000e+00> : vector<8x128xf32>
    %9 = tpu.matmul %1, %8, %cst_7 {dimension_numbers = #tpu.dot_dimension_numbers<[1], [0], [0], [1], [0, 0, 1, 1], [], []>} : vector<8x17xf32>, vector<17x128xf32>, vector<8x128xf32> -> vector<8x128xf32>
    %10 = arith.addf %7, %9 : vector<8x128xf32>
    %cst_8 = arith.constant 0.000000e+00 : f32
    %11 = vector.broadcast %cst_8 : f32 to vector<8x128xf32>
    %12 = arith.maximumf %10, %11 : vector<8x128xf32>
    %c0_9 = arith.constant 0 : index
    %c0_10 = arith.constant 0 : index
    %13 = vector.load %arg5[%c0_9, %c0_10] : memref<128x8xf32, #tpu.memory_space<vmem>>, vector<128x8xf32>
    %cst_11 = arith.constant dense<0.000000e+00> : vector<8x8xf32>
    %14 = tpu.matmul %12, %13, %cst_11 {dimension_numbers = #tpu.dot_dimension_numbers<[1], [0], [0], [1], [0, 0, 1, 1], [], []>} : vector<8x128xf32>, vector<128x8xf32>, vector<8x8xf32> -> vector<8x8xf32>
    %c0_12 = arith.constant 0 : index
    %c0_13 = arith.constant 0 : index
    %15 = vector.load %arg6[%c0_12, %c0_13] : memref<1x8xf32, #tpu.memory_space<vmem>>, vector<1x8xf32>
    %16 = vector.broadcast %15 : vector<1x8xf32> to vector<8x8xf32>
    %17 = arith.addf %14, %16 : vector<8x8xf32>
    %c0_14 = arith.constant 0 : index
    %c0_15 = arith.constant 0 : index
    %18 = vector.load %arg12[%c0_14, %c0_15] : memref<8x8xf32, #tpu.memory_space<vmem>>, vector<8x8xf32>
    tpu.vector_store %arg12[%c0_14, %c0_15], %17 {strides = array<i32>} : memref<8x8xf32, #tpu.memory_space<vmem>>, vector<8x8xf32>,
    %19 = vector.extract_strided_slice %17 {offsets = [0, 0], sizes = [8, 3], strides = [1, 1]} : vector<8x8xf32> to vector<8x3xf32>
    %20 = vector.extract_strided_slice %17 {offsets = [0, 3], sizes = [8, 3], strides = [1, 1]} : vector<8x8xf32> to vector<8x3xf32>
    %cst_16 = arith.constant 5.000000e-01 : f32
    %21 = vector.broadcast %cst_16 : f32 to vector<8x3xf32>
    %22 = arith.mulf %21, %20 : vector<8x3xf32>
    %23 = math.exp %22 : vector<8x3xf32>
    %24 = arith.mulf %3, %23 : vector<8x3xf32>
    %25 = arith.addf %19, %24 : vector<8x3xf32>
    %c0_17 = arith.constant 0 : index
    %c0_18 = arith.constant 0 : index
    %26 = vector.load %arg7[%c0_17, %c0_18] : memref<3x128xf32, #tpu.memory_space<vmem>>, vector<3x128xf32>
    %cst_19 = arith.constant dense<0.000000e+00> : vector<8x128xf32>
    %27 = tpu.matmul %25, %26, %cst_19 {dimension_numbers = #tpu.dot_dimension_numbers<[1], [0], [0], [1], [0, 0, 1, 1], [], []>} : vector<8x3xf32>, vector<3x128xf32>, vector<8x128xf32> -> vector<8x128xf32>
    %c0_20 = arith.constant 0 : index
    %c0_21 = arith.constant 0 : index
    %28 = vector.load %arg8[%c0_20, %c0_21] : memref<17x128xf32, #tpu.memory_space<vmem>>, vector<17x128xf32>
    %cst_22 = arith.constant dense<0.000000e+00> : vector<8x128xf32>
    %29 = tpu.matmul %2, %28, %cst_22 {dimension_numbers = #tpu.dot_dimension_numbers<[1], [0], [0], [1], [0, 0, 1, 1], [], []>} : vector<8x17xf32>, vector<17x128xf32>, vector<8x128xf32> -> vector<8x128xf32>
    %30 = arith.addf %27, %29 : vector<8x128xf32>
    %cst_23 = arith.constant 0.000000e+00 : f32
    %31 = vector.broadcast %cst_23 : f32 to vector<8x128xf32>
    %32 = arith.maximumf %30, %31 : vector<8x128xf32>
    %33 = arith.truncf %32 : vector<8x128xf32> to vector<8x128xbf16>
    %c0_24 = arith.constant 0 : index
    %c0_25 = arith.constant 0 : index
    %34 = vector.load %arg9[%c0_24, %c0_25] : memref<128x784xbf16, #tpu.memory_space<vmem>>, vector<128x784xbf16>
    %cst_26 = arith.constant dense<0.000000e+00> : vector<8x784xf32>
    %35 = tpu.matmul %33, %34, %cst_26 {dimension_numbers = #tpu.dot_dimension_numbers<[1], [0], [0], [1], [0, 0, 1, 1], [], []>} : vector<8x128xbf16>, vector<128x784xbf16>, vector<8x784xf32> -> vector<8x784xf32>
    %c0_27 = arith.constant 0 : index
    %c0_28 = arith.constant 0 : index
    %36 = vector.load %arg10[%c0_27, %c0_28] : memref<1x784xf32, #tpu.memory_space<vmem>>, vector<1x784xf32>
    %37 = vector.broadcast %36 : vector<1x784xf32> to vector<8x784xf32>
    %38 = arith.addf %35, %37 : vector<8x784xf32>
    %39 = arith.negf %38 : vector<8x784xf32>
    %40 = math.exp %39 : vector<8x784xf32>
    %cst_29 = arith.constant 1.000000e+00 : f32
    %41 = vector.broadcast %cst_29 : f32 to vector<8x784xf32>
    %42 = arith.addf %41, %40 : vector<8x784xf32>
    %43 = arith.divf %41, %42 : vector<8x784xf32>
    %44 = arith.truncf %43 : vector<8x784xf32> to vector<8x784xbf16>
    %c0_30 = arith.constant 0 : index
    %c0_31 = arith.constant 0 : index
    %45 = vector.load %arg11[%c0_30, %c0_31] : memref<8x784xbf16, #tpu.memory_space<vmem>>, vector<8x784xbf16>
    tpu.vector_store %arg11[%c0_30, %c0_31], %44 {strides = array<i32>} : memref<8x784xbf16, #tpu.memory_space<vmem>>, vector<8x784xbf16>,
    return
  }
  func.func @transform_0(%arg0: i32) -> (i32, i32) {
    %c0_i32 = arith.constant 0 : i32
    %c0_i32_0 = arith.constant 0 : i32
    return %arg0, %c0_i32 : i32, i32
  }
  func.func @transform_1(%arg0: i32) -> (i32, i32) {
    %c0_i32 = arith.constant 0 : i32
    %c0_i32_0 = arith.constant 0 : i32
    return %arg0, %c0_i32 : i32, i32
  }
  func.func @transform_2(%arg0: i32) -> (i32, i32) {
    %c0_i32 = arith.constant 0 : i32
    %c0_i32_0 = arith.constant 0 : i32
    %c0_i32_1 = arith.constant 0 : i32
    return %c0_i32, %c0_i32_0 : i32, i32
  }
  func.func @transform_3(%arg0: i32) -> (i32, i32) {
    %c0_i32 = arith.constant 0 : i32
    %c0_i32_0 = arith.constant 0 : i32
    %c0_i32_1 = arith.constant 0 : i32
    return %c0_i32, %c0_i32_0 : i32, i32
  }
  func.func @transform_4(%arg0: i32) -> (i32, i32) {
    %c0_i32 = arith.constant 0 : i32
    %c0_i32_0 = arith.constant 0 : i32
    %c0_i32_1 = arith.constant 0 : i32
    return %c0_i32, %c0_i32_0 : i32, i32
  }
  func.func @transform_5(%arg0: i32) -> (i32, i32) {
    %c0_i32 = arith.constant 0 : i32
    %c0_i32_0 = arith.constant 0 : i32
    %c0_i32_1 = arith.constant 0 : i32
    return %c0_i32, %c0_i32_0 : i32, i32
  }
  func.func @transform_6(%arg0: i32) -> (i32, i32) {
    %c0_i32 = arith.constant 0 : i32
    %c0_i32_0 = arith.constant 0 : i32
    %c0_i32_1 = arith.constant 0 : i32
    return %c0_i32, %c0_i32_0 : i32, i32
  }
  func.func @transform_7(%arg0: i32) -> (i32, i32) {
    %c0_i32 = arith.constant 0 : i32
    %c0_i32_0 = arith.constant 0 : i32
    %c0_i32_1 = arith.constant 0 : i32
    return %c0_i32, %c0_i32_0 : i32, i32
  }
  func.func @transform_8(%arg0: i32) -> (i32, i32) {
    %c0_i32 = arith.constant 0 : i32
    %c0_i32_0 = arith.constant 0 : i32
    %c0_i32_1 = arith.constant 0 : i32
    return %c0_i32, %c0_i32_0 : i32, i32
  }
  func.func @transform_9(%arg0: i32) -> (i32, i32) {
    %c0_i32 = arith.constant 0 : i32
    %c0_i32_0 = arith.constant 0 : i32
    %c0_i32_1 = arith.constant 0 : i32
    return %c0_i32, %c0_i32_0 : i32, i32
  }
  func.func @transform_10(%arg0: i32) -> (i32, i32) {
    %c0_i32 = arith.constant 0 : i32
    %c0_i32_0 = arith.constant 0 : i32
    return %arg0, %c0_i32 : i32, i32
  }
  func.func @transform_11(%arg0: i32) -> (i32, i32) {
    %c0_i32 = arith.constant 0 : i32
    %c0_i32_0 = arith.constant 0 : i32
    return %arg0, %c0_i32 : i32, i32
  }
}

</mosaic_0001>

<bundles_post_ra>
// kernel: cvae_forward.1
= control target key start
LH: loop header
LB: loop body
LE: loop exit
PB: predicated region body
PF: predicated region fallthrough
CT: control target
= control target key end

     0   :  { %vm158_vm0 = vcmask 1040384   ;;  %v2077_v0 = vmov 0.0   ;;  %vm2078_vm1 = vmmov 0   ;;  %vm154_vm2 = vcmask 138240   ;;  %s2080_s26 = smov 111   ;;  %s2081_s17 = smov 94   ;;  %s2630_s3 = inlined_call_operand.vmem [shape: f32[17,128], index: 3, kind: input, shape index: {}]   ;;  %s2631_s2 = inlined_call_operand.vmem [shape: bf16[784,128], index: 2, kind: input, shape index: {}]   ;;  %s2632_s1 = inlined_call_operand.vmem [shape: f32[8,37], index: 1, kind: input, shape index: {}]   ;;  %s2633_s0 = inlined_call_operand.vmem [shape: f32[8,784], index: 0, kind: input, shape index: {}]   ;;  %s2634_s4 = inlined_call_operand.vmem [shape: f32[128,8], index: 4, kind: input, shape index: {}]   ;;  %s2635_s5 = inlined_call_operand.vmem [shape: f32[1,8], index: 5, kind: input, shape index: {}]   ;;  %s2636_s11 = inlined_call_operand.vmem [shape: f32[8,8], index: 11, kind: output, shape index: {1}]   ;;  %s2637_s7 = inlined_call_operand.vmem [shape: f32[17,128], index: 7, kind: input, shape index: {}]   ;;  %s2638_s8 = inlined_call_operand.vmem [shape: bf16[128,784], index: 8, kind: input, shape index: {}]   ;;  %s2639_s6 = inlined_call_operand.vmem [shape: f32[3,128], index: 6, kind: input, shape index: {}]   ;;  %s2640_s9 = inlined_call_operand.vmem [shape: f32[1,784], index: 9, kind: input, shape index: {}]   ;;  %s2641_s10 = inlined_call_operand.vmem [shape: bf16[8,784], index: 10, kind: output, shape index: {0}]  }
   0x1   :  { %1828 = vmatprep.subr.mxu0 %v2077_v0  ;;  %v153_v1 = vld [vmem:[%s2630_s3 + $0x10] sm:$0x1]  ;;  %v152_v2 = vld [vmem:[%s2630_s3 + $0x8] sm:$0xff]  ;;  %1834 = vmatprep.mubr.msk.f32.mxu0 %vm2078_vm1, %v2077_v0  ;;  %v1918_v3 = vld [vmem:[%s2631_s2 + $0x78] sm:$0xff]   ;;  %vm526_vm3 = vcmask 130048   ;;  %vm784_vm4 = vcmask 64512  }
   0x2   :  { %1829 = vmatpush3.msk.msra.mxu0 %vm158_vm0, %v153_v1  ;;  %v1919_v4 = vld [vmem:[%s2631_s2 + $0x38] sm:$0xff]   ;;  %v151_v5 = vld [vmem:[%s2630_s3] sm:$0xff]  ;;  %1728 = vmatprep.subr.bf16.mxu1 %v1918_v3  ;;  %v1921_v8 = vld [vmem:[%s2631_s2 + $0x70] sm:$0xff]   ;;  %vm884_vm5 = vcmask 1042432   ;;  %vm880_vm6 = vcmask 23552   ;;  %vm1586_vm7 = vcmask 125952  }
   0x3   :  { %1830 = vmatprep.subr.mxu0 %v2077_v0  ;;  %v1920_v6 = vld [vmem:[%s2631_s2 + $0xf8] sm:$0xff]   ;;  %1729 = vmatpush3.bf16.msra.mxu1 %v1919_v4  ;;  %v2170_v7 = vld [vmem:[%s2632_s1] sm:$0xff]  ;;  %v1923_v10 = vld [vmem:[%s2631_s2 + $0x30] sm:$0xff]  }
   0x4   :  { %1831 = vmatpush3.msra.mxu0 %v152_v2  ;;  %v1922_v9 = vld [vmem:[%s2631_s2 + $0xb8] sm:$0xff]   ;;  %1730 = vmatprep.subr.bf16.mxu1 %v1921_v8  ;;  %v1924_v11 = vld [vmem:[%s2631_s2 + $0xf0] sm:$0xff]   ;;  %v1925_v12 = vld [vmem:[%s2631_s2 + $0x68] sm:$0xff]  }
   0x5   :  { %1832 = vmatprep.subr.mxu0 %v2077_v0  ;;  %v1926_v13 = vld [vmem:[%s2631_s2 + $0xb0] sm:$0xff]   ;;  %v1927_v14 = vld [vmem:[%s2631_s2 + $0x28] sm:$0xff]   ;;  %v1929_v16 = vld [vmem:[%s2631_s2 + $0x60] sm:$0xff]  }
   0x6   :  { %1833 = vmatpush3.msra.mxu0 %v151_v5  ;;  %v1928_v15 = vld [vmem:[%s2631_s2 + $0xe8] sm:$0xff]   ;;  %v1931_v18 = vld [vmem:[%s2631_s2 + $0x20] sm:$0xff]   ;;  %v1933_v20 = vld [vmem:[%s2631_s2 + $0x58] sm:$0xff]  }
   0x7   :  { %1750 = vmatprep.subr.bf16.mxu0 %v1920_v6  ;;  %1835 = vmatmul.mubr.msk.f32.vlgmr.msra.gmra.mxu0 %vm154_vm2, %v2170_v7  ;;  %v1930_v17 = vld [vmem:[%s2631_s2 + $0xa8] sm:$0xff]   ;;  %v1932_v19 = vld [vmem:[%s2631_s2 + $0xe0] sm:$0xff]   ;;  %v1935_v22 = vld [vmem:[%s2631_s2 + $0x18] sm:$0xff]  }
   0x8   :  { %1751 = vmatpush3.bf16.msra.mxu0 %v1922_v9  ;;  %1731 = vmatpush3.bf16.msra.mxu1 %v1923_v10  ;;  %v1934_v21 = vld [vmem:[%s2631_s2 + $0xa0] sm:$0xff]   ;;  %v1936_v23 = vld [vmem:[%s2631_s2 + $0xd8] sm:$0xff]   ;;  %v1937_v24 = vld [vmem:[%s2631_s2 + $0x50] sm:$0xff]  }
   0x9   :  { %1752 = vmatprep.subr.bf16.mxu0 %v1924_v11  ;;  %1732 = vmatprep.subr.bf16.mxu1 %v1925_v12  ;;  %v1938_v25 = vld [vmem:[%s2631_s2 + $0x98] sm:$0xff]   ;;  %v1939_v26 = vld [vmem:[%s2631_s2 + $0x10] sm:$0xff]   ;;  %v1941_v28 = vld [vmem:[%s2631_s2 + $0x48] sm:$0xff]  }
   0xa   :  { %v1940_v27 = vld [vmem:[%s2631_s2 + $0xd0] sm:$0xff]   ;;  %v1943_v30 = vld [vmem:[%s2631_s2 + $0x8] sm:$0xff]   ;;  %v1945_v32 = vld [vmem:[%s2631_s2 + $0x40] sm:$0xff]  }
   0xb   :  { %v1942_v29 = vld [vmem:[%s2631_s2 + $0x90] sm:$0xff]   ;;  %v1944_v31 = vld [vmem:[%s2631_s2 + $0xc8] sm:$0xff]   ;;  %v1947_v34 = vld [vmem:[%s2631_s2] sm:$0xff]  }
   0xc   :  { %1753 = vmatpush3.bf16.msra.mxu0 %v1926_v13  ;;  %1733 = vmatpush3.bf16.msra.mxu1 %v1927_v14  ;;  %v1946_v33 = vld [vmem:[%s2631_s2 + $0x88] sm:$0xff]   ;;  %v1948_v37 = vld [vmem:[%s2631_s2 + $0xc0] sm:$0xff]   ;;  %v1950_v41 = vld [vmem:[%s2631_s2 + $0x178] sm:$0xff]  }
   0xd   :  { %1754 = vmatprep.subr.bf16.mxu0 %v1928_v15  ;;  %1734 = vmatprep.subr.bf16.mxu1 %v1929_v16  ;;  %v40_v35 = vld [vmem:[%s2633_s0 + $0x8] sm:$0xff]  ;;  %v39_v38 = vld [vmem:[%s2633_s0] sm:$0xff]  ;;  %v1951_v42 = vld [vmem:[%s2631_s2 + $0x138] sm:$0xff]  }
   0xe   :  { %v47_v36 = vpack.c.bf16 %v40_v35, %v40_v35  ;;  %v46_v39 = vpack.c.bf16 %v39_v38, %v39_v38  ;;  %v1949_v40 = vld [vmem:[%s2631_s2 + $0x80] sm:$0xff]   ;;  %v42_v43 = vld [vmem:[%s2633_s0 + $0x18] sm:$0xff]  ;;  %v41_v44 = vld [vmem:[%s2633_s0 + $0x10] sm:$0xff] }
   0xf   :  { %v49_v45 = vpack.c.bf16 %v42_v43, %v42_v43  ;;  %v48_v46 = vpack.c.bf16 %v41_v44, %v41_v44  ;;  %v1952_v47 = vld [vmem:[%s2631_s2 + $0x170] sm:$0xff]   ;;  %v1954_v49 = vld [vmem:[%s2631_s2 + $0x168] sm:$0xff]   ;;  %v1956_v51 = vld [vmem:[%s2631_s2 + $0x160] sm:$0xff]  }
  0x10   :  { %1755 = vmatpush3.bf16.msra.mxu0 %v1930_v17  ;;  %1735 = vmatpush3.bf16.msra.mxu1 %v1931_v18  ;;  %v1953_v48 = vld [vmem:[%s2631_s2 + $0x130] sm:$0xff]   ;;  %v1955_v50 = vld [vmem:[%s2631_s2 + $0x128] sm:$0xff]   ;;  %v1957_v52 = vld [vmem:[%s2631_s2 + $0x120] sm:$0xff]  }
  0x11   :  { %1756 = vmatprep.subr.bf16.mxu0 %v1932_v19  ;;  %1736 = vmatprep.subr.bf16.mxu1 %v1933_v20  ;;  %v1958_v53 = vld [vmem:[%s2631_s2 + $0x158] sm:$0xff]   ;;  %v1960_v55 = vld [vmem:[%s2631_s2 + $0x150] sm:$0xff]   ;;  %v1966_v56 = vld [vmem:[%s2631_s2 + $0x180] sm:$0xff]  }
  0x12   :  { %562 = vmatprep.mubr.bf16.mxu1 %v47_v36  ;;  %602 = vmatprep.mubr.bf16.mxu0 %v49_v45  ;;  %v1959_v54 = vld [vmem:[%s2631_s2 + $0x118] sm:$0xff]   ;;  %v44_v57 = vld [vmem:[%s2633_s0 + $0x28] sm:$0xff]  ;;  %v45_v59 = vld [vmem:[%s2633_s0 + $0x30] sm:$0xff] }
  0x13   :  { %v51_v58 = vpack.c.bf16 %v44_v57, %v44_v57  ;;  %v52_v60 = vpack.c.bf16 %v45_v59, %v45_v59  ;;  %v1961_v61 = vld [vmem:[%s2631_s2 + $0x110] sm:$0xff]   ;;  %v1962_v62 = vld [vmem:[%s2631_s2 + $0x148] sm:$0xff]   ;;  %v1964_v1 = vld [vmem:[%s2631_s2 + $0x140] sm:$0xff]  }
  0x14   :  { %1757 = vmatpush3.bf16.msra.mxu0 %v1934_v21  ;;  %1737 = vmatpush3.bf16.msra.mxu1 %v1935_v22  ;;  %v1963_v63 = vld [vmem:[%s2631_s2 + $0x108] sm:$0xff]   ;;  %v1965_v2 = vld [vmem:[%s2631_s2 + $0x100] sm:$0xff]   ;;  %v706_v5 = vld [vmem:[%s2634_s4 + $0x78] sm:$0xff] }
  0x15   :  { %1758 = vmatprep.subr.bf16.mxu0 %v1936_v23  ;;  %1738 = vmatprep.subr.bf16.mxu1 %v1937_v24  ;;  %v43_v3 = vld [vmem:[%s2633_s0 + $0x20] sm:$0xff]  ;;  %v705_v6 = vld [vmem:[%s2634_s4 + $0x70] sm:$0xff]  ;;  %v704_v8 = vld [vmem:[%s2634_s4 + $0x68] sm:$0xff] }
  0x16   :  { %v50_v4 = vpack.c.bf16 %v43_v3, %v43_v3  ;;  %v703_v9 = vld [vmem:[%s2634_s4 + $0x60] sm:$0xff]  ;;  %v702_v10 = vld [vmem:[%s2634_s4 + $0x58] sm:$0xff]  ;;  %v701_v11 = vld [vmem:[%s2634_s4 + $0x50] sm:$0xff] }
  0x17   :  { %v700_v12 = vld [vmem:[%s2634_s4 + $0x48] sm:$0xff]  ;;  %v699_v13 = vld [vmem:[%s2634_s4 + $0x40] sm:$0xff]  ;;  %v698_v14 = vld [vmem:[%s2634_s4 + $0x38] sm:$0xff] }
  0x18   :  { %1759 = vmatpush3.bf16.msra.mxu0 %v1938_v25  ;;  %1739 = vmatpush3.bf16.msra.mxu1 %v1939_v26  ;;  %v697_v15 = vld [vmem:[%s2634_s4 + $0x30] sm:$0xff]  ;;  %v696_v16 = vld [vmem:[%s2634_s4 + $0x28] sm:$0xff]  ;;  %v695_v17 = vld [vmem:[%s2634_s4 + $0x20] sm:$0xff] }
  0x19   :  { %1760 = vmatprep.subr.bf16.mxu0 %v1940_v27  ;;  %1740 = vmatprep.subr.bf16.mxu1 %v1941_v28  ;;  %v694_v18 = vld [vmem:[%s2634_s4 + $0x18] sm:$0xff]  ;;  %v693_v19 = vld [vmem:[%s2634_s4 + $0x10] sm:$0xff]  ;;  %v692_v20 = vld [vmem:[%s2634_s4 + $0x8] sm:$0xff] }
  0x1a   :  { %v691_v21 = vld [vmem:[%s2634_s4] sm:$0xff]  ;;  %v1972_v59 = vld [vmem:[%s2638_s8 + $0x194] ss:$28 sps:$4 sm:$0xff]   ;;  %v1969_v3 = vld [vmem:[%s2638_s8 + $0x18c] ss:$28 sps:$4 sm:$0xff]  }
  0x1c   :  { %1761 = vmatpush3.bf16.msra.mxu0 %v1942_v29  ;;  %1741 = vmatpush3.bf16.msra.mxu1 %v1943_v30 }
  0x1d   :  { %1762 = vmatprep.subr.bf16.mxu0 %v1944_v31  ;;  %1742 = vmatprep.subr.bf16.mxu1 %v1945_v32 }
  0x20   :  { %1763 = vmatpush3.bf16.msra.mxu0 %v1946_v33  ;;  %1743 = vmatpush3.bf16.msra.mxu1 %v1947_v34 }
  0x21   :  { %1764 = vmatprep.subr.bf16.mxu0 %v1948_v37  ;;  %1772 = vmatprep.subr.bf16.mxu1 %v1950_v41 }
  0x23   :  { %563 = vmatmul.mubr.bf16.vlgmr.msra.gmra.mxu1 %v46_v39 }
  0x24   :  { %1765 = vmatpush3.bf16.msra.mxu0 %v1949_v40  ;;  %1773 = vmatpush3.bf16.msra.mxu1 %v1951_v42 }
  0x25   :  { %1837 = vmatprep.subr.bf16.mxu0 %v2077_v0  ;;  %1774 = vmatprep.subr.bf16.mxu1 %v1952_v47 }
  0x26   :  { %642 = vmatprep.mubr.bf16.mxu1 %v51_v58  ;;  %v1970_v58 = vld [vmem:[%s2638_s8 + $0x190] ss:$28 sps:$4 sm:$0xff]  }
  0x27   :  { %603 = vmatmul.mubr.bf16.vlgmr.msra.gmra.mxu0 %v48_v46 }
  0x28   :  { %1839 = vmatprep.mubr.msk.bf16.mxu0 %vm2078_vm1, %v2077_v0  ;;  %1775 = vmatpush3.bf16.msra.mxu1 %v1953_v48  ;;  %v1648_v48 = vld [vmem:[%s2635_s5] ss:$0 sm:$0xff] }
  0x29   :  { %1776 = vmatprep.subr.bf16.mxu1 %v1954_v49  ;;  %1838 = vmatpush3.bf16.msra.mxu0 %v1966_v56  ;;  %v800_v56 = vld [vmem:[%s2637_s7] sm:$0xff] }
  0x2a   :  { %1843 = vmatprep.subr.mxu0 %v2077_v0 }
  0x2c   :  { %1777 = vmatpush3.bf16.msra.mxu1 %v1955_v50 }
  0x2d   :  { %1778 = vmatprep.subr.bf16.mxu1 %v1956_v51 }
  0x2f   :  { %1840 = vmatmul.mubr.msk.bf16.vlgmr.msra.gmra.mxu0 %vm526_vm3, %v52_v60  ;;  %v1976_v60 = vld [vmem:[%s2638_s8 + $0x158] ss:$28 sps:$4 sm:$0xff]  }
  0x30   :  { %1779 = vmatpush3.bf16.msra.mxu1 %v1957_v52  ;;  %1875 = vmatprep.mubr.msk.f32.mxu0 %vm2078_vm1, %v2077_v0 }
  0x31   :  { %1780 = vmatprep.subr.bf16.mxu1 %v1958_v53  ;;  %1844 = vmatpush3.msra.mxu0 %v706_v5 }
  0x32   :  { %1845 = vmatprep.subr.mxu0 %v2077_v0 }
  0x33   :  { %1846 = vmatpush3.msra.mxu0 %v705_v6  ;;  %v1988_v6 = vld [vmem:[%s2638_s8 + $0xe8] ss:$28 sps:$4 sm:$0xff]  }
  0x34   :  { %1781 = vmatpush3.bf16.msra.mxu1 %v1959_v54  ;;  %1847 = vmatprep.subr.mxu0 %v2077_v0  ;;  %v802_v54 = vld [vmem:[%s2637_s7 + $0x10] sm:$0x1] }
  0x35   :  { %1782 = vmatprep.subr.bf16.mxu1 %v1960_v55  ;;  %1848 = vmatpush3.msra.mxu0 %v704_v8  ;;  %v801_v55 = vld [vmem:[%s2637_s7 + $0x8] sm:$0xff]  ;;  %v1996_v8 = vld [vmem:[%s2638_s8 + $0xb4] ss:$28 sps:$4 sm:$0xff]  }
  0x36   :  { %1849 = vmatprep.subr.mxu0 %v2077_v0 }
  0x37   :  { %1850 = vmatpush3.msra.mxu0 %v703_v9  ;;  %v1994_v9 = vld [vmem:[%s2638_s8 + $0xb0] ss:$28 sps:$4 sm:$0xff]  }
  0x38   :  { %1783 = vmatpush3.bf16.msra.mxu1 %v1961_v61  ;;  %1851 = vmatprep.subr.mxu0 %v2077_v0  ;;  %v1978_v61 = vld [vmem:[%s2638_s8 + $0x15c] ss:$28 sps:$4 sm:$0xff]  }
  0x39   :  { %1784 = vmatprep.subr.bf16.mxu1 %v1962_v62  ;;  %1852 = vmatpush3.msra.mxu0 %v702_v10  ;;  %v2000_v10 = vld [vmem:[%s2638_s8 + $0x78] ss:$28 sps:$4 sm:$0xff]  }
  0x3a   :  { %1853 = vmatprep.subr.mxu0 %v2077_v0 }
  0x3b   :  { %1854 = vmatpush3.msra.mxu0 %v701_v11  ;;  %v2002_v11 = vld [vmem:[%s2638_s8 + $0x7c] ss:$28 sps:$4 sm:$0xff]  }
  0x3c   :  { %1785 = vmatpush3.bf16.msra.mxu1 %v1963_v63  ;;  %1855 = vmatprep.subr.mxu0 %v2077_v0  ;;  %v1984_v63 = vld [vmem:[%s2638_s8 + $0x124] ss:$28 sps:$4 sm:$0xff]  }
  0x3d   :  { %1786 = vmatprep.subr.bf16.mxu1 %v1964_v1  ;;  %1856 = vmatpush3.msra.mxu0 %v700_v12  ;;  %v2008_v12 = vld [vmem:[%s2638_s8 + $0x44] ss:$28 sps:$4 sm:$0xff]  }
  0x3e   :  { %1857 = vmatprep.subr.mxu0 %v2077_v0 }
  0x3f   :  { %1858 = vmatpush3.msra.mxu0 %v699_v13  ;;  %v2006_v13 = vld [vmem:[%s2638_s8 + $0x40] ss:$28 sps:$4 sm:$0xff]  }
  0x40   :  { %1787 = vmatpush3.bf16.msra.mxu1 %v1965_v2  ;;  %1859 = vmatprep.subr.mxu0 %v2077_v0  ;;  %v799_v2 = vld [vmem:[%s2639_s6] sm:$0x7] }
  0x41   :  { %1878 = vmatprep.subr.mxu1 %v2077_v0  ;;  %1860 = vmatpush3.msra.mxu0 %v698_v14 }
  0x42   :  { %1861 = vmatprep.subr.mxu0 %v2077_v0 }
  0x43   :  { %643 = vmatmul.mubr.bf16.vlgmr.msra.gmra.mxu1 %v50_v4  ;;  %1862 = vmatpush3.msra.mxu0 %v697_v15  ;;  %v1982_v4 = vld [vmem:[%s2638_s8 + $0x120] ss:$28 sps:$4 sm:$0xff]   ;;  %v1967_v15 = vld [vmem:[%s2638_s8 + $0x188] ss:$28 sps:$4 sm:$0xff]  }
  0x44   :  { %1884 = vmatprep.mubr.msk.f32.mxu1 %vm2078_vm1, %v2077_v0  ;;  %1863 = vmatprep.subr.mxu0 %v2077_v0 }
  0x45   :  { %1864 = vmatpush3.msra.mxu0 %v696_v16  ;;  %1879 = vmatpush3.msk.msra.mxu1 %vm158_vm0, %v802_v54  ;;  %v2031_v54 = vld [vmem:[%s2638_s8 + $0xb8] ss:$28 sps:$4 sm:$0xff]  }
  0x46   :  { %1865 = vmatprep.subr.mxu0 %v2077_v0  ;;  %1880 = vmatprep.subr.mxu1 %v2077_v0 }
  0x47   :  { %1866 = vmatpush3.msra.mxu0 %v695_v17  ;;  %1881 = vmatpush3.msra.mxu1 %v801_v55  ;;  %v1975_v17 = vld [vmem:[%s2638_s8 + $0x154] ss:$28 sps:$4 sm:$0xff]   ;;  %v2034_v55 = vld [vmem:[%s2638_s8 + $0xc0] ss:$28 sps:$4 sm:$0xff]  }
  0x48   :  { %1867 = vmatprep.subr.mxu0 %v2077_v0  ;;  %1882 = vmatprep.subr.mxu1 %v2077_v0 }
  0x49   :  { %1868 = vmatpush3.msra.mxu0 %v694_v18  ;;  %1883 = vmatpush3.msra.mxu1 %v800_v56  ;;  %v1973_v18 = vld [vmem:[%s2638_s8 + $0x150] ss:$28 sps:$4 sm:$0xff]   ;;  %v2037_v56 = vld [vmem:[%s2638_s8 + $0x84] ss:$28 sps:$4 sm:$0xff]  }
  0x4a   :  { %1869 = vmatprep.subr.mxu0 %v2077_v0  ;;  %1887 = vmatprep.subr.mxu1 %v2077_v0 }
  0x4b   :  { %1870 = vmatpush3.msra.mxu0 %v693_v19  ;;  %v1981_v19 = vld [vmem:[%s2638_s8 + $0x11c] ss:$28 sps:$4 sm:$0xff]  }
  0x4c   :  { %1871 = vmatprep.subr.mxu0 %v2077_v0 }
  0x4d   :  { %1872 = vmatpush3.msra.mxu0 %v692_v20  ;;  %v1979_v20 = vld [vmem:[%s2638_s8 + $0x118] ss:$28 sps:$4 sm:$0xff]  }
  0x4e   :  { %1873 = vmatprep.subr.mxu0 %v2077_v0 }
  0x4f   :  { %1874 = vmatpush3.msra.mxu0 %v691_v21  ;;  %v1987_v21 = vld [vmem:[%s2638_s8 + $0xe4] ss:$28 sps:$4 sm:$0xff]  }
  0x50   :  { %1390 = vmatprep.subr.bf16.mxu0 %v1972_v59  ;;  %v2041_v59 = vld [vmem:[%s2638_s8 + $0x4c] ss:$28 sps:$4 sm:$0xff]  }
  0xc7   :  { %v228_v22 = vpop.f32.mrf.mxu0 }
  0xc9   :  { %v1836_v23 = vpop.f32.mrf.mxu0 }
  0xca   :  { %v1993_v23 = vld [vmem:[%s2638_s8 + $0xac] ss:$28 sps:$4 sm:$0xff]  }
  0xe3   :  { %v1744_v24 = vpop.f32.mrf.mxu1 }
  0xe5   :  { %v1745_v25 = vpop.f32.mrf.mxu1 }
  0xe6   :  { %v1746_v36 = vadd.f32 %v1745_v25, %v1744_v24  ;;  %v1991_v24 = vld [vmem:[%s2638_s8 + $0xa8] ss:$28 sps:$4 sm:$0xff]   ;;  %v1999_v25 = vld [vmem:[%s2638_s8 + $0x74] ss:$28 sps:$4 sm:$0xff]  }
  0xe7   :  { %v1766_v26 = vpop.f32.mrf.mxu0  ;;  %v1747_v27 = vpop.f32.mrf.mxu1 }
  0xe8   :  { %v565_v39 = vadd.f32 %v1746_v36, %v228_v22  ;;  %v1985_v22 = vld [vmem:[%s2638_s8 + $0xe0] ss:$28 sps:$4 sm:$0xff]  }
  0xe9   :  { %v1767_v28 = vpop.f32.mrf.mxu0  ;;  %v1748_v29 = vpop.f32.mrf.mxu1  ;;  %v2005_v27 = vld [vmem:[%s2638_s8 + $0x3c] ss:$28 sps:$4 sm:$0xff]  }
  0xea   :  { %v1768_v37 = vadd.f32 %v1767_v28, %v1766_v26  ;;  %v1997_v26 = vld [vmem:[%s2638_s8 + $0x70] ss:$28 sps:$4 sm:$0xff]   ;;  %v2003_v28 = vld [vmem:[%s2638_s8 + $0x38] ss:$28 sps:$4 sm:$0xff]   ;;  %v2011_v29 = vld [vmem:[%s2638_s8 + $0x4] ss:$28 sps:$4 sm:$0xff]  }
  0xeb   :  { %v1769_v30 = vpop.f32.mrf.mxu0 }
  0xec   :  { %v605_v41 = vadd.f32 %v1768_v37, %v565_v39  ;;  %v2014_v30 = vld [vmem:[%s2638_s8 + $0xc] ss:$28 sps:$4 sm:$0xff]  }
  0xed   :  { %v1770_v31 = vpop.f32.mrf.mxu0 }
  0xee   :  { %v2009_v31 = vld [vmem:[%s2638_s8] ss:$28 sps:$4 sm:$0xff]  }
  0xef   :  { %v684_v32 = vpop.f32.mrf.mxu0 }
  0xf1   :  { %v1841_v33 = vpop.f32.mrf.mxu0 }
  0xf2   :  { %v2017_v33 = vld [vmem:[%s2638_s8 + $0x19c] ss:$28 sps:$4 sm:$0xff]  }
  0xf3   :  { %v687_v34 = vpop.f32.mrf.mxu0 }
  0xf4   :  { %v2082_v34 = vmov 0  }
  0xf5   :  { %v1842_v35 = vpop.f32.mrf.mxu0 }
 0x103   :  { %v1788_v38 = vpop.f32.mrf.mxu1 }
 0x105   :  { %v1789_v40 = vpop.f32.mrf.mxu1 }
 0x106   :  { %v1790_v42 = vadd.f32 %v1789_v40, %v1788_v38 }
 0x107   :  { %v1791_v43 = vpop.f32.mrf.mxu1 }
 0x108   :  { %v645_v44 = vadd.f32 %v1790_v42, %v605_v41  ;;  %v2015_v41 = vld [vmem:[%s2638_s8 + $0x198] ss:$28 sps:$4 sm:$0xff]   ;;  %v2018_v42 = vld [vmem:[%s2638_s8 + $0x1a0] ss:$28 sps:$4 sm:$0xff]  }
 0x109   :  { %v1792_v45 = vpop.f32.mrf.mxu1 }
 0x10a   :  { %v685_v46 = vadd.f32 %v684_v32, %v645_v44  ;;  %v2012_v32 = vld [vmem:[%s2638_s8 + $0x8] ss:$28 sps:$4 sm:$0xff]   ;;  %v2019_v45 = vld [vmem:[%s2638_s8 + $0x160] ss:$28 sps:$4 sm:$0xff]  }
 0x10b   :  { %v2021_v44 = vld [vmem:[%s2638_s8 + $0x164] ss:$28 sps:$4 sm:$0xff]  }
 0x10c   :  { %v690_v47 = vmax.f32 %v685_v46, 0.0  ;;  %v2022_v46 = vld [vmem:[%s2638_s8 + $0x168] ss:$28 sps:$4 sm:$0xff]  }
 0x10e   :  { %1876 = vmatmul.mubr.f32.vlgmr.msra.gmra.mxu0 %v690_v47  ;;  %v2025_v47 = vld [vmem:[%s2638_s8 + $0x12c] ss:$28 sps:$4 sm:$0xff]  }
 0x10f   :  { %1391 = vmatpush1.bf16.msra.mxu0 %v1970_v58  ;;  %1422 = vmatprep.mubr.bf16.mxu0 %v2082_v34  ;;  %v2038_v58 = vld [vmem:[%s2638_s8 + $0x88] ss:$28 sps:$4 sm:$0xff]  }
 0x110   :  { %1392 = vmatprep.subr.bf16.mxu0 %v1978_v61  ;;  %v2042_v61 = vld [vmem:[%s2638_s8 + $0x50] ss:$28 sps:$4 sm:$0xff]  }
 0x113   :  { %1393 = vmatpush1.bf16.msra.mxu0 %v1976_v60  ;;  %v2039_v60 = vld [vmem:[%s2638_s8 + $0x48] ss:$28 sps:$4 sm:$0xff]  }
 0x114   :  { %1394 = vmatprep.subr.bf16.mxu0 %v1984_v63  ;;  %v2043_v63 = vld [vmem:[%s2638_s8 + $0x10] ss:$28 sps:$4 sm:$0xff]  }
 0x117   :  { %1395 = vmatpush1.bf16.msra.mxu0 %v1982_v4 }
 0x1ce   :  { %v780_v49 = vpop.f32.mrf.mxu0 }
 0x1cf   :  { %v2408_v50 = vadd.f32 %v1648_v48, %v780_v49  ;;  %v2023_v48 = vld [vmem:[%s2638_s8 + $0x128] ss:$28 sps:$4 sm:$0xff]   ;;  %v2026_v49 = vld [vmem:[%s2638_s8 + $0x130] ss:$28 sps:$4 sm:$0xff]  }
 0x1d0   :  { %v1877_v51 = vpop.f32.mrf.mxu0 }
 0x1d1   :  { %785 = vst.msk [vmem:[%s2636_s11] sm:$0xff] %vm784_vm4, %v2408_v50  ;;  %v786_v52 = vmul.f32 0.5, %v2408_v50  ;;  %s2079_s11 = smov 31   ;;  %v2027_v51 = vld [vmem:[%s2638_s8 + $0xf0] ss:$28 sps:$4 sm:$0xff]  }
 0x1d3   :  { %v787_v53 = vmul.f32 1.442695, %v786_v52  ;;  %v2030_v52 = vld [vmem:[%s2638_s8 + $0xf8] ss:$28 sps:$4 sm:$0xff]  }
 0x1d5   :  { %2047 = vpow2.f32 %v787_v53  ;;  %v2033_v53 = vld [vmem:[%s2638_s8 + $0xbc] ss:$28 sps:$4 sm:$0xff]  }
 0x1e2   :  { %v2048_v57 = vpop.eup %2047 }
 0x1e3   :  { %790 = vrot.lane.b32.xlu0 %v2048_v57, %s2079_s11  ;;  %v2035_v57 = vld [vmem:[%s2638_s8 + $0x80] ss:$28 sps:$4 sm:$0xff]  }
 0x1e7   :  { %803 = vrot.lane.b32.xlu0 %v2170_v7, %s2080_s26 }
 0x255   :  { %v791_v62 = vpop.permute.xlu0 %790 }
 0x256   :  { %v793_v1 = vmul.f32 %v791_v62, %v2170_v7  ;;  %v1990_v7 = vld [vmem:[%s2638_s8 + $0xec] ss:$28 sps:$4 sm:$0xff]   ;;  %v2045_v62 = vld [vmem:[%s2638_s8 + $0x14] ss:$28 sps:$4 sm:$0xff]  }
 0x257   :  { %1396 = vmatprep.subr.bf16.mxu0 %v1990_v7 }
 0x258   :  { %795 = vrot.lane.b32.xlu1 %v793_v1, %s2081_s17  ;;  %1397 = vmatpush1.bf16.msra.mxu0 %v1988_v6  ;;  %v2046_v1 = vld [vmem:[%s2638_s8 + $0x18] ss:$28 sps:$4 sm:$0xff]  }
 0x259   :  { %v804_v5 = vpop.permute.xlu0 %803  ;;  %1398 = vmatprep.subr.bf16.mxu0 %v1996_v8 }
 0x25a   :  { %1885 = vmatmul.mubr.msk.f32.vlgmr.msra.gmra.mxu1 %vm154_vm2, %v804_v5  ;;  %v1024_v5 = vld [vmem:[%s2640_s9] sm:$0x7f] }
 0x25b   :  { %1888 = vmatpush3.msk.msra.mxu1 %vm884_vm5, %v799_v2  ;;  %1889 = vmatprep.mubr.msk.f32.mxu1 %vm2078_vm1, %v2077_v0  ;;  %v1026_v2 = vlaneseq }
 0x25c   :  { %1349 = vmatprep.subr.bf16.mxu1 %v1969_v3  ;;  %1399 = vmatpush1.bf16.msra.mxu0 %v1994_v9 }
 0x25d   :  { %1400 = vmatprep.subr.bf16.mxu0 %v2002_v11  ;;  %v1027_v3 = vshrl.u32 %v1026_v2, 7 }
 0x25f   :  { %v1028_v4 = vsub.s32 0, %v1027_v3  ;;  %v1036_v7 = vsub.s32 2, %v1027_v3  ;;  %v1032_v6 = vsub.s32 1, %v1027_v3  ;;  %v1040_v8 = vsub.s32 3, %v1027_v3 }
 0x260   :  { %1401 = vmatpush1.bf16.msra.mxu0 %v2000_v10 }
 0x261   :  { %1402 = vmatprep.subr.bf16.mxu0 %v2008_v12  ;;  %v1029_v9 = vrot.slane %v1024_v5, %v1028_v4  ;;  %v1037_v10 = vrot.slane %v1024_v5, %v1036_v7  ;;  %v1033_v11 = vrot.slane %v1024_v5, %v1032_v6  ;;  %v1041_v12 = vrot.slane %v1024_v5, %v1040_v8 }
 0x264   :  { %1403 = vmatpush1.bf16.msra.mxu0 %v2006_v13 }
 0x265   :  { %1404 = vmatprep.subr.bf16.mxu0 %v2014_v30 }
 0x268   :  { %1405 = vmatpush1.bf16.msra.mxu0 %v2012_v32 }
 0x269   :  { %1892 = vmatprep.subr.bf16.mxu0 %v2077_v0 }
 0x2ca   :  { %v796_v14 = vpop.permute.xlu1 %795 }
 0x2cb   :  { %v798_v16 = vadd.f32 %v796_v14, %v2408_v50  ;;  %v2029_v50 = vld [vmem:[%s2638_s8 + $0xf4] ss:$28 sps:$4 sm:$0xff]  }
 0x2cd   :  { %1890 = vmatmul.mubr.msk.f32.vlgmr.msra.gmra.mxu1 %vm880_vm6, %v798_v16 }
 0x2ce   :  { %1350 = vmatpush1.bf16.msra.mxu1 %v1967_v15  ;;  %1381 = vmatprep.mubr.bf16.mxu1 %v2082_v34 }
 0x2cf   :  { %1351 = vmatprep.subr.bf16.mxu1 %v1975_v17 }
 0x2d2   :  { %1352 = vmatpush1.bf16.msra.mxu1 %v1973_v18 }
 0x2d3   :  { %1353 = vmatprep.subr.bf16.mxu1 %v1981_v19 }
 0x2d6   :  { %1354 = vmatpush1.bf16.msra.mxu1 %v1979_v20 }
 0x2d7   :  { %1355 = vmatprep.subr.bf16.mxu1 %v1987_v21 }
 0x2da   :  { %1356 = vmatpush1.bf16.msra.mxu1 %v1985_v22 }
 0x2db   :  { %1357 = vmatprep.subr.bf16.mxu1 %v1993_v23 }
 0x2de   :  { %1358 = vmatpush1.bf16.msra.mxu1 %v1991_v24 }
 0x2df   :  { %1359 = vmatprep.subr.bf16.mxu1 %v1999_v25 }
 0x2e2   :  { %1360 = vmatpush1.bf16.msra.mxu1 %v1997_v26 }
 0x2e3   :  { %1361 = vmatprep.subr.bf16.mxu1 %v2005_v27 }
 0x2e6   :  { %1362 = vmatpush1.bf16.msra.mxu1 %v2003_v28 }
 0x2e7   :  { %1363 = vmatprep.subr.bf16.mxu1 %v2011_v29 }
 0x2ea   :  { %1364 = vmatpush1.bf16.msra.mxu1 %v2009_v31 }
 0x2eb   :  { %1431 = vmatprep.subr.bf16.mxu1 %v2017_v33 }
 0x31a   :  { %v876_v35 = vpop.f32.mrf.mxu1 }
 0x31c   :  { %v1886_v36 = vpop.f32.mrf.mxu1 }
 0x31d   :  { %v1044_v36 = vsub.s32 4, %v1027_v3 }
 0x38d   :  { %v954_v37 = vpop.f32.mrf.mxu1 }
 0x38e   :  { %v955_v38 = vadd.f32 %v954_v37, %v876_v35  ;;  %v1052_v37 = vsub.s32 6, %v1027_v3 }
 0x38f   :  { %v1891_v39 = vpop.f32.mrf.mxu1 }
 0x390   :  { %v958_v40 = vmax.f32 %v955_v38, 0.0  ;;  %v1048_v38 = vsub.s32 5, %v1027_v3  ;;  %v1045_v39 = vrot.slane %v1024_v5, %v1044_v36 }
 0x392   :  { %v959_v43 = vpack.c.bf16 %v958_v40, %v958_v40  ;;  %v1053_v40 = vrot.slane %v1024_v5, %v1052_v37 }
 0x394   :  { %1382 = vmatmul.mubr.bf16.vlgmr.msra.gmra.mxu1 %v959_v43  ;;  %1423 = vmatmul.mubr.bf16.vlgmr.msra.gmra.mxu0 %v959_v43 }
 0x395   :  { %1432 = vmatpush1.bf16.msra.mxu1 %v2015_v41  ;;  %1893 = vmatpush3.bf16.msra.mxu0 %v2018_v42  ;;  %v1049_v41 = vrot.slane %v1024_v5, %v1048_v38 }
 0x396   :  { %1433 = vmatprep.subr.bf16.mxu1 %v2021_v44  ;;  %1894 = vmatprep.subr.bf16.mxu0 %v2077_v0 }
 0x397   :  { %1463 = vmatprep.mubr.bf16.mxu1 %v2082_v34  ;;  %1908 = vmatprep.mubr.msk.bf16.mxu0 %vm2078_vm1, %v2077_v0 }
 0x399   :  { %1434 = vmatpush1.bf16.msra.mxu1 %v2019_v45  ;;  %1895 = vmatpush3.bf16.msra.mxu0 %v2022_v46 }
 0x39a   :  { %1435 = vmatprep.subr.bf16.mxu1 %v2025_v47  ;;  %1896 = vmatprep.subr.bf16.mxu0 %v2077_v0 }
 0x39d   :  { %1436 = vmatpush1.bf16.msra.mxu1 %v2023_v48  ;;  %1897 = vmatpush3.bf16.msra.mxu0 %v2026_v49 }
 0x39e   :  { %1437 = vmatprep.subr.bf16.mxu1 %v2029_v50  ;;  %1898 = vmatprep.subr.bf16.mxu0 %v2077_v0 }
 0x3a1   :  { %1438 = vmatpush1.bf16.msra.mxu1 %v2027_v51  ;;  %1899 = vmatpush3.bf16.msra.mxu0 %v2030_v52 }
 0x3a2   :  { %1439 = vmatprep.subr.bf16.mxu1 %v2033_v53  ;;  %1900 = vmatprep.subr.bf16.mxu0 %v2077_v0 }
 0x3a5   :  { %1440 = vmatpush1.bf16.msra.mxu1 %v2031_v54  ;;  %1901 = vmatpush3.bf16.msra.mxu0 %v2034_v55 }
 0x3a6   :  { %1441 = vmatprep.subr.bf16.mxu1 %v2037_v56  ;;  %1902 = vmatprep.subr.bf16.mxu0 %v2077_v0 }
 0x3a9   :  { %1442 = vmatpush1.bf16.msra.mxu1 %v2035_v57  ;;  %1903 = vmatpush3.bf16.msra.mxu0 %v2038_v58 }
 0x3aa   :  { %1443 = vmatprep.subr.bf16.mxu1 %v2041_v59  ;;  %1904 = vmatprep.subr.bf16.mxu0 %v2077_v0 }
 0x3ad   :  { %1444 = vmatpush1.bf16.msra.mxu1 %v2039_v60  ;;  %1905 = vmatpush3.bf16.msra.mxu0 %v2042_v61 }
 0x3ae   :  { %1445 = vmatprep.subr.bf16.mxu1 %v2045_v62  ;;  %1906 = vmatprep.subr.bf16.mxu0 %v2077_v0 }
 0x3b1   :  { %1446 = vmatpush1.bf16.msra.mxu1 %v2043_v63  ;;  %1907 = vmatpush3.bf16.msra.mxu0 %v2046_v1 }
 0x3b4   :  { %1464 = vmatmul.mubr.bf16.vlgmr.msra.gmra.mxu1 %v959_v43  ;;  %1909 = vmatmul.mubr.bf16.vlgmr.msra.gmra.mxu0 %v959_v43 }
 0x454   :  { %v1383_v13 = vpop.f32.mrf.mxu1  ;;  %v1424_v0 = vpop.f32.mrf.mxu0 }
 0x455   :  { %v1384_v14 = vadd.f32 %v1383_v13, %v1029_v9  ;;  %v1425_v15 = vadd.f32 %v1424_v0, %v1037_v10 }
 0x456   :  { %v1385_v16 = vpop.f32.mrf.mxu1  ;;  %v1426_v17 = vpop.f32.mrf.mxu0 }
 0x457   :  { %v1709_v18 = vmul.f32 -1.442695, %v1384_v14  ;;  %v1711_v19 = vmul.f32 -1.442695, %v1425_v15  ;;  %v1386_v20 = vadd.f32 %v1385_v16, %v1033_v11  ;;  %v1427_v21 = vadd.f32 %v1426_v17, %v1041_v12 }
 0x458   :  { %v1387_v22 = vpop.f32.mrf.mxu1  ;;  %v1428_v23 = vpop.f32.mrf.mxu0 }
 0x459   :  { %2049 = vpow2.f32 %v1709_v18  ;;  %v1710_v24 = vmul.f32 -1.442695, %v1386_v20  ;;  %v1712_v25 = vmul.f32 -1.442695, %v1427_v21 }
 0x45a   :  { %2051 = vpow2.f32 %v1711_v19  ;;  %v1388_v26 = vpop.f32.mrf.mxu1  ;;  %v1429_v27 = vpop.f32.mrf.mxu0 }
 0x45b   :  { %2053 = vpow2.f32 %v1710_v24 }
 0x45c   :  { %2055 = vpow2.f32 %v1712_v25 }
 0x466   :  { %v2050_v28 = vpop.eup %2049 }
 0x467   :  { %v2052_v29 = vpop.eup %2051  ;;  %v1533_v30 = vadd.f32 1.0, %v2050_v28 }
 0x468   :  { %v2054_v31 = vpop.eup %2053  ;;  %v1535_v32 = vadd.f32 1.0, %v2052_v29 }
 0x469   :  { %v2056_v33 = vpop.eup %2055  ;;  %2057 = vrcp.f32 %v1533_v30  ;;  %v1534_v34 = vadd.f32 1.0, %v2054_v31 }
 0x46a   :  { %2059 = vrcp.f32 %v1535_v32  ;;  %v1536_v35 = vadd.f32 1.0, %v2056_v33 }
 0x46b   :  { %2061 = vrcp.f32 %v1534_v34 }
 0x46c   :  { %2063 = vrcp.f32 %v1536_v35 }
 0x474   :  { %v1465_v42 = vpop.f32.mrf.mxu1  ;;  %v1506_v43 = vpop.f32.mrf.mxu0 }
 0x475   :  { %v1466_v44 = vadd.f32 %v1465_v42, %v1045_v39  ;;  %v1507_v45 = vadd.f32 %v1506_v43, %v1053_v40 }
 0x476   :  { %v2058_v46 = vpop.eup %2057  ;;  %v1467_v47 = vpop.f32.mrf.mxu1 }
 0x477   :  { %v1910_v48 = vpop.f32.mrf.mxu0  ;;  %v2060_v49 = vpop.eup %2059  ;;  %v1713_v50 = vmul.f32 -1.442695, %v1466_v44  ;;  %v1715_v51 = vmul.f32 -1.442695, %v1507_v45  ;;  %v1468_v52 = vadd.f32 %v1467_v47, %v1049_v41 }
 0x478   :  { %v2062_v53 = vpop.eup %2061  ;;  %v1469_v54 = vpop.f32.mrf.mxu1 }
 0x479   :  { %v1509_v55 = vpop.f32.mrf.mxu0  ;;  %v2064_v56 = vpop.eup %2063  ;;  %v1720_v57 = vpack.c.bf16 %v2062_v53, %v2058_v46  ;;  %2065 = vpow2.f32 %v1713_v50  ;;  %v1714_v58 = vmul.f32 -1.442695, %v1468_v52 }
 0x47a   :  { %v1721_v59 = vpack.c.bf16 %v2064_v56, %v2060_v49  ;;  %2067 = vpow2.f32 %v1715_v51  ;;  %v1470_v60 = vpop.f32.mrf.mxu1 }
 0x47b   :  { %v1911_v61 = vpop.f32.mrf.mxu0  ;;  %1583 = vst [vmem:[%s2641_s10] sm:$0xff] %v1720_v57  ;;  %2069 = vpow2.f32 %v1714_v58 }
 0x47c   :  { %1584 = vst [vmem:[%s2641_s10 + $0x8] sm:$0xff] %v1721_v59 }
 0x486   :  { %v2066_v62 = vpop.eup %2065 }
 0x487   :  { %v2068_v63 = vpop.eup %2067  ;;  %v1537_v1 = vadd.f32 1.0, %v2066_v62 }
 0x488   :  { %v2070_v2 = vpop.eup %2069  ;;  %v1539_v3 = vadd.f32 1.0, %v2068_v63 }
 0x489   :  { %2071 = vrcp.f32 %v1537_v1  ;;  %v1538_v4 = vadd.f32 1.0, %v2070_v2 }
 0x48a   :  { %2073 = vrcp.f32 %v1539_v3 }
 0x48b   :  { %2075 = vrcp.f32 %v1538_v4 }
 0x496   :  { %v2072_v7 = vpop.eup %2071 }
 0x497   :  { %v2074_v5 = vpop.eup %2073 }
 0x498   :  { %v2076_v6 = vpop.eup %2075  ;;  %v1723_v8 = vpack.c.bf16 %v2074_v5, %v2074_v5 }
 0x499   :  { %v1722_v9 = vpack.c.bf16 %v2076_v6, %v2072_v7 }
 0x49a   :  { %1587 = vst.msk [vmem:[%s2641_s10 + $0x18] sm:$0xf] %vm1586_vm7, %v1723_v8 }
 0x49b   :  { %1585 = vst [vmem:[%s2641_s10 + $0x10] sm:$0xff] %v1722_v9 }

</bundles_post_ra>
